<compile_context>
chip_gen: v5e
topology: v5e:2x2
jax: 0.10.0
libtpu: 0.0.40
codegen_flags: <defaults>
</compile_context>

<pallas_src>
import functools

import jax
import jax.numpy as jnp
from jax.experimental import pallas as pl
from jax.experimental.pallas import tpu as pltpu


def _conv_bn_lrelu_kernel(p00_ref, p01_ref, p10_ref, p11_ref, w_ref, scale_ref,
                          shift_ref, o_ref, stack_ref, *, w_stride):
    """One (batch, cout-tile, lane-tile) grid step.

    p{pi}{pj}_ref : (CinP, TW)     halo'd lane window of parity plane (pi, pj)
    w_ref         : (CT, 9*CinP)   weights, column tp*CinP + c, tap tp = ki*3+kj
    scale_ref     : (CT, 1) f32    BN scale  gamma / sqrt(var + eps)
    shift_ref     : (CT, 1) f32    BN shift  beta - mean * scale
    o_ref         : (CT, TL)       lane-dense output tile
    stack_ref     : (9*CinP, TL)   VMEM scratch: stacked im2col RHS
    w_stride      : OW + 1 (flattened-row stride of the parity planes)
    """
    cinp = p00_ref.shape[0]
    tl = o_ref.shape[-1]
    planes = ((p00_ref, p01_ref), (p10_ref, p11_ref))

    # Stack the 9 tap windows into one RHS so a single MXU contraction
    # (K = 9*CinP) does all the work.
    for ki in range(3):
        for kj in range(3):
            tp = ki * 3 + kj
            s = (ki // 2) * w_stride + (kj // 2)          # static lane offset
            stack_ref[tp * cinp:(tp + 1) * cinp, :] = (
                planes[ki % 2][kj % 2][:, pl.ds(s, tl)])

    acc = jnp.dot(w_ref[...], stack_ref[...],
                  preferred_element_type=jnp.float32)      # (CT, TL) f32
    y = acc * scale_ref[...] + shift_ref[...]              # BN (eval) in f32
    o_ref[...] = jnp.maximum(y, 0.1 * y).astype(o_ref.dtype)   # LeakyReLU(0.1)


@functools.partial(
    jax.jit,
    static_argnames=("compute_dtype", "out_dtype", "lane_tile", "cout_tile"))
def downsampling_layer(x_nchw, weight, gamma, beta, running_mean, running_var,
                       eps=1e-5, compute_dtype=jnp.bfloat16, out_dtype=None,
                       lane_tile=2048, cout_tile=512):
    """x_nchw: (N, Cin, H, W);  weight: (Cout, Cin, 3, 3) (PyTorch OIHW)."""
    N, Cin, H, W = x_nchw.shape
    Cout = weight.shape[0]
    assert weight.shape[1] == Cin and weight.shape[2:] == (3, 3)
    assert lane_tile % 128 == 0 and cout_tile % 8 == 0
    if out_dtype is None:
        out_dtype = x_nchw.dtype

    OH = (H - 1) // 2 + 1
    OW = (W - 1) // 2 + 1
    w_stride = OW + 1
    Lp = (OH + 1) * (OW + 1)          # flattened parity-plane length
    L_out = OH * (OW + 1)             # lane-dense output width (1 slack col/row)

    # ---- lane (flat-spatial) tiling ----------------------------------------
    if L_out <= lane_tile:
        TL, n_t = L_out, 1
    else:
        TL, n_t = lane_tile, -(-L_out // lane_tile)
    TW = TL + w_stride + 1            # halo covers tap offsets {0, 1, OW+1, OW+2}
    pad_len = (n_t - 1) * TL + TW

    # ---- output-channel tiling ---------------------------------------------
    if Cout <= cout_tile:
        CT, n_co, Cout_pad = Cout, 1, Cout
    else:
        CT = cout_tile
        n_co = -(-Cout // CT)
        Cout_pad = n_co * CT

    # ---- pad Cin to a multiple of 8 so every tap's scratch row is aligned ---
    CinP = ((Cin + 7) // 8) * 8

    # ---- parity planes (cast to compute dtype BEFORE padding) ---------------
    xc = x_nchw.astype(compute_dtype)
    if CinP != Cin:
        xc = jnp.pad(xc, ((0, 0), (0, CinP - Cin), (0, 0), (0, 0)))
    Hp, Wp = 2 * OH + 2, 2 * OW + 2   # even padded extents (conv pad + slack)
    xpad = jnp.pad(xc, ((0, 0), (0, 0), (1, Hp - H - 1), (1, Wp - W - 1)))

    planes = []
    for pi in range(2):
        for pj in range(2):
            p = xpad[:, :, pi::2, pj::2].reshape(N, CinP, Lp)
            p = jnp.pad(p, ((0, 0), (0, 0), (0, pad_len - Lp)))
            if n_t == 1:
                p = p[:, None]                                    # (N,1,CinP,TW)
            else:
                # Duplicate the (OW+2)-lane halo per tile so the kernel-side
                # BlockSpec is a plain non-overlapping block.
                p = jnp.stack([p[:, :, t * TL:t * TL + TW] for t in range(n_t)],
                              axis=1)                             # (N,n_t,CinP,TW)
            planes.append(p)

    # ---- BN (eval) as an f32 epilogue (scale NOT folded into bf16 weights) --
    inv_std = (gamma / jnp.sqrt(running_var + eps)).astype(jnp.float32)
    scale = inv_std.reshape(Cout, 1)
    shift = (beta.astype(jnp.float32)
             - running_mean.astype(jnp.float32) * inv_std).reshape(Cout, 1)

    wq = weight
    if CinP != Cin:
        wq = jnp.pad(wq, ((0, 0), (0, CinP - Cin), (0, 0), (0, 0)))
    # (Cout, CinP, 3, 3) -> (Cout, 9*CinP); column index tp*CinP + c, tp = ki*3+kj
    w2 = jnp.transpose(wq, (0, 2, 3, 1)).reshape(Cout, 9 * CinP)
    w2 = w2.astype(compute_dtype)
    if Cout_pad != Cout:
        w2 = jnp.pad(w2, ((0, Cout_pad - Cout), (0, 0)))
        scale = jnp.pad(scale, ((0, Cout_pad - Cout), (0, 0)))
        shift = jnp.pad(shift, ((0, Cout_pad - Cout), (0, 0)))

    kernel = functools.partial(_conv_bn_lrelu_kernel, w_stride=w_stride)

    plane_spec = pl.BlockSpec((None, None, CinP, TW),
                              lambda n, co, t: (n, t, 0, 0))
    csz = jnp.dtype(compute_dtype).itemsize
    osz = jnp.dtype(out_dtype).itemsize
    cost = pl.CostEstimate(
        flops=2 * 9 * CinP * Cout_pad * N * n_t * TL,
        transcendentals=0,
        bytes_accessed=((4 * N * n_t * CinP * TW + Cout_pad * 9 * CinP) * csz
                        + 2 * Cout_pad * 4
                        + N * Cout_pad * n_t * TL * osz))

    out_flat = pl.pallas_call(
        kernel,
        out_shape=jax.ShapeDtypeStruct((N, Cout_pad, n_t * TL), out_dtype),
        grid_spec=pltpu.PrefetchScalarGridSpec(
            num_scalar_prefetch=0,
            grid=(N, n_co, n_t),
            in_specs=[plane_spec, plane_spec, plane_spec, plane_spec,
                      pl.BlockSpec((CT, 9 * CinP), lambda n, co, t: (co, 0)),
                      pl.BlockSpec((CT, 1), lambda n, co, t: (co, 0)),
                      pl.BlockSpec((CT, 1), lambda n, co, t: (co, 0))],
            out_specs=pl.BlockSpec((None, CT, TL), lambda n, co, t: (n, co, t)),
            scratch_shapes=[pltpu.VMEM((9 * CinP, TL), compute_dtype)],
        ),
        compiler_params=pltpu.CompilerParams(
            dimension_semantics=("parallel", "parallel", "parallel"),
            vmem_limit_bytes=48 * 1024 * 1024,   # headroom under v7x 64 MiB physical
        ),
        cost_estimate=cost,
    )(*planes, w2, scale, shift)

    # (N, Cout_pad, n_t*TL) -> NCHW, dropping channel/lane padding + slack column.
    out = out_flat[:, :Cout, :L_out].reshape(N, Cout, OH, OW + 1)[:, :, :, :OW]
    return out


def _reference(x_nchw, weight, gamma, beta, running_mean, running_var, eps=1e-5):
    conv = jax.lax.conv_general_dilated(
        x_nchw, weight, window_strides=(2, 2), padding=((1, 1), (1, 1)),
        dimension_numbers=("NCHW", "OIHW", "NCHW"))
    inv_std = gamma / jnp.sqrt(running_var + eps)
    scale = inv_std.reshape(1, -1, 1, 1)
    shift = (beta - running_mean * inv_std).reshape(1, -1, 1, 1)
    y = conv * scale + shift
    return jnp.where(y > 0, y, 0.1 * y)


if __name__ == "__main__":
    key = jax.random.PRNGKey(0)
    kx, kw, kg, kb, km, kv = jax.random.split(key, 6)

    # --- Test 1: module-default small shapes, single-tile path ---------------
    N, Cin, H, W, Cout = 2, 4, 16, 16, 8
    x = jax.random.normal(kx, (N, Cin, H, W), dtype=jnp.float32)
    weight = jax.random.normal(kw, (Cout, Cin, 3, 3), dtype=jnp.float32) * 0.1
    gamma = jax.random.normal(kg, (Cout,), dtype=jnp.float32) * 0.1 + 1.0
    beta = jax.random.normal(kb, (Cout,), dtype=jnp.float32) * 0.1
    running_mean = jax.random.normal(km, (Cout,), dtype=jnp.float32) * 0.1
    running_var = jnp.abs(jax.random.normal(kv, (Cout,), dtype=jnp.float32)) * 0.1 + 1.0

    ref = _reference(x, weight, gamma, beta, running_mean, running_var)

    out_f32 = jax.block_until_ready(downsampling_layer(
        x, weight, gamma, beta, running_mean, running_var,
        compute_dtype=jnp.float32))
    assert out_f32.shape == (N, Cout, H // 2, W // 2), out_f32.shape
    assert jnp.allclose(out_f32, ref, atol=1e-4, rtol=1e-4), \
        float(jnp.max(jnp.abs(out_f32 - ref)))

    out_bf16 = jax.block_until_ready(downsampling_layer(
        x, weight, gamma, beta, running_mean, running_var,
        compute_dtype=jnp.bfloat16))
    assert out_bf16.shape == (N, Cout, H // 2, W // 2), out_bf16.shape
    assert jnp.allclose(out_bf16, ref, atol=5e-2, rtol=5e-2), \
        float(jnp.max(jnp.abs(out_bf16 - ref)))

    # --- Test 2: exercise the lane-tile and cout-tile grid paths (still small)
    N2, Cin2, H2, W2, Cout2 = 1, 8, 32, 32, 16
    k2 = jax.random.split(key, 12)
    x2 = jax.random.normal(k2[6], (N2, Cin2, H2, W2), dtype=jnp.float32)
    w2_ = jax.random.normal(k2[7], (Cout2, Cin2, 3, 3), dtype=jnp.float32) * 0.1
    g2 = jax.random.normal(k2[8], (Cout2,), dtype=jnp.float32) * 0.1 + 1.0
    b2 = jax.random.normal(k2[9], (Cout2,), dtype=jnp.float32) * 0.1
    m2 = jax.random.normal(k2[10], (Cout2,), dtype=jnp.float32) * 0.1
    v2 = jnp.abs(jax.random.normal(k2[11], (Cout2,), dtype=jnp.float32)) * 0.1 + 1.0
    ref2 = _reference(x2, w2_, g2, b2, m2, v2)

    out2 = jax.block_until_ready(downsampling_layer(
        x2, w2_, g2, b2, m2, v2, compute_dtype=jnp.float32,
        lane_tile=128, cout_tile=8))     # forces n_t=3, n_co=2
    assert out2.shape == (N2, Cout2, H2 // 2, W2 // 2), out2.shape
    assert jnp.allclose(out2, ref2, atol=1e-4, rtol=1e-4), \
        float(jnp.max(jnp.abs(out2 - ref2)))

    print("KERNEL_OK")
</pallas_src>

<mosaic_0001>
module attributes {stable_mosaic.version = 11 : i64} {
  func.func @_conv_bn_lrelu_kernel(%arg0: i32, %arg1: i32, %arg2: i32, %arg3: memref<1x1x8x82xf32, #tpu.memory_space<vmem>>, %arg4: memref<1x1x8x82xf32, #tpu.memory_space<vmem>>, %arg5: memref<1x1x8x82xf32, #tpu.memory_space<vmem>>, %arg6: memref<1x1x8x82xf32, #tpu.memory_space<vmem>>, %arg7: memref<8x72xf32, #tpu.memory_space<vmem>>, %arg8: memref<8x1xf32, #tpu.memory_space<vmem>>, %arg9: memref<8x1xf32, #tpu.memory_space<vmem>>, %arg10: memref<1x8x72xf32, #tpu.memory_space<vmem>>, %arg11: memref<72x72xf32, #tpu.memory_space<vmem>>) attributes {dimension_semantics = [#tpu.dimension_semantics<parallel>, #tpu.dimension_semantics<parallel>, #tpu.dimension_semantics<parallel>], iteration_bounds = array<i64: 2, 1, 1>, scalar_prefetch = 0 : i64, scratch_operands = 1 : i64, tpu.core_type = #tpu.core_type<tc>, window_params = [{transform_indices = @transform_0, window_bounds = array<i64: 1, 1, 8, 82>}, {transform_indices = @transform_1, window_bounds = array<i64: 1, 1, 8, 82>}, {transform_indices = @transform_2, window_bounds = array<i64: 1, 1, 8, 82>}, {transform_indices = @transform_3, window_bounds = array<i64: 1, 1, 8, 82>}, {transform_indices = @transform_4, window_bounds = array<i64: 8, 72>}, {transform_indices = @transform_5, window_bounds = array<i64: 8, 1>}, {transform_indices = @transform_6, window_bounds = array<i64: 8, 1>}, {transform_indices = @transform_7, window_bounds = array<i64: 1, 8, 72>}]} {
    %c0 = arith.constant 0 : index
    %c0_0 = arith.constant 0 : index
    %c0_1 = arith.constant 0 : index
    %c0_2 = arith.constant 0 : index
    %0 = vector.load %arg3[%c0, %c0_0, %c0_1, %c0_2] : memref<1x1x8x82xf32, #tpu.memory_space<vmem>>, vector<1x1x8x72xf32>
    %1 = vector.shape_cast %0 : vector<1x1x8x72xf32> to vector<8x72xf32>
    %c0_3 = arith.constant 0 : index
    %c0_4 = arith.constant 0 : index
    %2 = vector.load %arg11[%c0_3, %c0_4] : memref<72x72xf32, #tpu.memory_space<vmem>>, vector<8x72xf32>
    tpu.vector_store %arg11[%c0_3, %c0_4], %1 {strides = array<i32>} : memref<72x72xf32, #tpu.memory_space<vmem>>, vector<8x72xf32>,
    %c0_5 = arith.constant 0 : index
    %c0_6 = arith.constant 0 : index
    %c0_7 = arith.constant 0 : index
    %c0_8 = arith.constant 0 : index
    %3 = vector.load %arg4[%c0_5, %c0_6, %c0_7, %c0_8] : memref<1x1x8x82xf32, #tpu.memory_space<vmem>>, vector<1x1x8x72xf32>
    %4 = vector.shape_cast %3 : vector<1x1x8x72xf32> to vector<8x72xf32>
    %c8 = arith.constant 8 : index
    %c0_9 = arith.constant 0 : index
    %5 = vector.load %arg11[%c8, %c0_9] : memref<72x72xf32, #tpu.memory_space<vmem>>, vector<8x72xf32>
    tpu.vector_store %arg11[%c8, %c0_9], %4 {strides = array<i32>} : memref<72x72xf32, #tpu.memory_space<vmem>>, vector<8x72xf32>,
    %c0_10 = arith.constant 0 : index
    %c0_11 = arith.constant 0 : index
    %c0_12 = arith.constant 0 : index
    %c1 = arith.constant 1 : index
    %6 = vector.load %arg3[%c0_10, %c0_11, %c0_12, %c1] : memref<1x1x8x82xf32, #tpu.memory_space<vmem>>, vector<1x1x8x72xf32>
    %7 = vector.shape_cast %6 : vector<1x1x8x72xf32> to vector<8x72xf32>
    %c16 = arith.constant 16 : index
    %c0_13 = arith.constant 0 : index
    %8 = vector.load %arg11[%c16, %c0_13] : memref<72x72xf32, #tpu.memory_space<vmem>>, vector<8x72xf32>
    tpu.vector_store %arg11[%c16, %c0_13], %7 {strides = array<i32>} : memref<72x72xf32, #tpu.memory_space<vmem>>, vector<8x72xf32>,
    %c0_14 = arith.constant 0 : index
    %c0_15 = arith.constant 0 : index
    %c0_16 = arith.constant 0 : index
    %c0_17 = arith.constant 0 : index
    %9 = vector.load %arg5[%c0_14, %c0_15, %c0_16, %c0_17] : memref<1x1x8x82xf32, #tpu.memory_space<vmem>>, vector<1x1x8x72xf32>
    %10 = vector.shape_cast %9 : vector<1x1x8x72xf32> to vector<8x72xf32>
    %c24 = arith.constant 24 : index
    %c0_18 = arith.constant 0 : index
    %11 = vector.load %arg11[%c24, %c0_18] : memref<72x72xf32, #tpu.memory_space<vmem>>, vector<8x72xf32>
    tpu.vector_store %arg11[%c24, %c0_18], %10 {strides = array<i32>} : memref<72x72xf32, #tpu.memory_space<vmem>>, vector<8x72xf32>,
    %c0_19 = arith.constant 0 : index
    %c0_20 = arith.constant 0 : index
    %c0_21 = arith.constant 0 : index
    %c0_22 = arith.constant 0 : index
    %12 = vector.load %arg6[%c0_19, %c0_20, %c0_21, %c0_22] : memref<1x1x8x82xf32, #tpu.memory_space<vmem>>, vector<1x1x8x72xf32>
    %13 = vector.shape_cast %12 : vector<1x1x8x72xf32> to vector<8x72xf32>
    %c32 = arith.constant 32 : index
    %c0_23 = arith.constant 0 : index
    %14 = vector.load %arg11[%c32, %c0_23] : memref<72x72xf32, #tpu.memory_space<vmem>>, vector<8x72xf32>
    tpu.vector_store %arg11[%c32, %c0_23], %13 {strides = array<i32>} : memref<72x72xf32, #tpu.memory_space<vmem>>, vector<8x72xf32>,
    %c0_24 = arith.constant 0 : index
    %c0_25 = arith.constant 0 : index
    %c0_26 = arith.constant 0 : index
    %c1_27 = arith.constant 1 : index
    %15 = vector.load %arg5[%c0_24, %c0_25, %c0_26, %c1_27] : memref<1x1x8x82xf32, #tpu.memory_space<vmem>>, vector<1x1x8x72xf32>
    %16 = vector.shape_cast %15 : vector<1x1x8x72xf32> to vector<8x72xf32>
    %c40 = arith.constant 40 : index
    %c0_28 = arith.constant 0 : index
    %17 = vector.load %arg11[%c40, %c0_28] : memref<72x72xf32, #tpu.memory_space<vmem>>, vector<8x72xf32>
    tpu.vector_store %arg11[%c40, %c0_28], %16 {strides = array<i32>} : memref<72x72xf32, #tpu.memory_space<vmem>>, vector<8x72xf32>,
    %c0_29 = arith.constant 0 : index
    %c0_30 = arith.constant 0 : index
    %c0_31 = arith.constant 0 : index
    %c9 = arith.constant 9 : index
    %18 = vector.load %arg3[%c0_29, %c0_30, %c0_31, %c9] : memref<1x1x8x82xf32, #tpu.memory_space<vmem>>, vector<1x1x8x72xf32>
    %19 = vector.shape_cast %18 : vector<1x1x8x72xf32> to vector<8x72xf32>
    %c48 = arith.constant 48 : index
    %c0_32 = arith.constant 0 : index
    %20 = vector.load %arg11[%c48, %c0_32] : memref<72x72xf32, #tpu.memory_space<vmem>>, vector<8x72xf32>
    tpu.vector_store %arg11[%c48, %c0_32], %19 {strides = array<i32>} : memref<72x72xf32, #tpu.memory_space<vmem>>, vector<8x72xf32>,
    %c0_33 = arith.constant 0 : index
    %c0_34 = arith.constant 0 : index
    %c0_35 = arith.constant 0 : index
    %c9_36 = arith.constant 9 : index
    %21 = vector.load %arg4[%c0_33, %c0_34, %c0_35, %c9_36] : memref<1x1x8x82xf32, #tpu.memory_space<vmem>>, vector<1x1x8x72xf32>
    %22 = vector.shape_cast %21 : vector<1x1x8x72xf32> to vector<8x72xf32>
    %c56 = arith.constant 56 : index
    %c0_37 = arith.constant 0 : index
    %23 = vector.load %arg11[%c56, %c0_37] : memref<72x72xf32, #tpu.memory_space<vmem>>, vector<8x72xf32>
    tpu.vector_store %arg11[%c56, %c0_37], %22 {strides = array<i32>} : memref<72x72xf32, #tpu.memory_space<vmem>>, vector<8x72xf32>,
    %c0_38 = arith.constant 0 : index
    %c0_39 = arith.constant 0 : index
    %c0_40 = arith.constant 0 : index
    %c10 = arith.constant 10 : index
    %24 = vector.load %arg3[%c0_38, %c0_39, %c0_40, %c10] : memref<1x1x8x82xf32, #tpu.memory_space<vmem>>, vector<1x1x8x72xf32>
    %25 = vector.shape_cast %24 : vector<1x1x8x72xf32> to vector<8x72xf32>
    %c64 = arith.constant 64 : index
    %c0_41 = arith.constant 0 : index
    %26 = vector.load %arg11[%c64, %c0_41] : memref<72x72xf32, #tpu.memory_space<vmem>>, vector<8x72xf32>
    tpu.vector_store %arg11[%c64, %c0_41], %25 {strides = array<i32>} : memref<72x72xf32, #tpu.memory_space<vmem>>, vector<8x72xf32>,
    %c0_42 = arith.constant 0 : index
    %c0_43 = arith.constant 0 : index
    %27 = vector.load %arg7[%c0_42, %c0_43] : memref<8x72xf32, #tpu.memory_space<vmem>>, vector<8x72xf32>
    %c0_44 = arith.constant 0 : index
    %c0_45 = arith.constant 0 : index
    %28 = vector.load %arg11[%c0_44, %c0_45] : memref<72x72xf32, #tpu.memory_space<vmem>>, vector<72x72xf32>
    %cst = arith.constant dense<0.000000e+00> : vector<8x72xf32>
    %29 = tpu.matmul %27, %28, %cst {dimension_numbers = #tpu.dot_dimension_numbers<[1], [0], [0], [1], [0, 0, 1, 1], [], []>} : vector<8x72xf32>, vector<72x72xf32>, vector<8x72xf32> -> vector<8x72xf32>
    %c0_46 = arith.constant 0 : index
    %c0_47 = arith.constant 0 : index
    %30 = vector.load %arg8[%c0_46, %c0_47] : memref<8x1xf32, #tpu.memory_space<vmem>>, vector<8x1xf32>
    %31 = vector.broadcast %30 : vector<8x1xf32> to vector<8x72xf32>
    %32 = arith.mulf %29, %31 : vector<8x72xf32>
    %c0_48 = arith.constant 0 : index
    %c0_49 = arith.constant 0 : index
    %33 = vector.load %arg9[%c0_48, %c0_49] : memref<8x1xf32, #tpu.memory_space<vmem>>, vector<8x1xf32>
    %34 = vector.broadcast %33 : vector<8x1xf32> to vector<8x72xf32>
    %35 = arith.addf %32, %34 : vector<8x72xf32>
    %cst_50 = arith.constant 1.000000e-01 : f32
    %36 = vector.broadcast %cst_50 : f32 to vector<8x72xf32>
    %37 = arith.mulf %36, %35 : vector<8x72xf32>
    %38 = arith.maximumf %35, %37 : vector<8x72xf32>
    %c0_51 = arith.constant 0 : index
    %c0_52 = arith.constant 0 : index
    %c0_53 = arith.constant 0 : index
    %39 = vector.load %arg10[%c0_51, %c0_52, %c0_53] : memref<1x8x72xf32, #tpu.memory_space<vmem>>, vector<1x8x72xf32>
    %40 = vector.shape_cast %39 : vector<1x8x72xf32> to vector<8x72xf32>
    %41 = vector.shape_cast %38 : vector<8x72xf32> to vector<1x8x72xf32>
    tpu.vector_store %arg10[%c0_51, %c0_52, %c0_53], %41 {strides = array<i32>} : memref<1x8x72xf32, #tpu.memory_space<vmem>>, vector<1x8x72xf32>,
    return
  }
  func.func @transform_0(%arg0: i32, %arg1: i32, %arg2: i32) -> (i32, i32, i32, i32) {
    %c0_i32 = arith.constant 0 : i32
    %c0_i32_0 = arith.constant 0 : i32
    %c0_i32_1 = arith.constant 0 : i32
    return %arg0, %arg2, %c0_i32, %c0_i32_0 : i32, i32, i32, i32
  }
  func.func @transform_1(%arg0: i32, %arg1: i32, %arg2: i32) -> (i32, i32, i32, i32) {
    %c0_i32 = arith.constant 0 : i32
    %c0_i32_0 = arith.constant 0 : i32
    %c0_i32_1 = arith.constant 0 : i32
    return %arg0, %arg2, %c0_i32, %c0_i32_0 : i32, i32, i32, i32
  }
  func.func @transform_2(%arg0: i32, %arg1: i32, %arg2: i32) -> (i32, i32, i32, i32) {
    %c0_i32 = arith.constant 0 : i32
    %c0_i32_0 = arith.constant 0 : i32
    %c0_i32_1 = arith.constant 0 : i32
    return %arg0, %arg2, %c0_i32, %c0_i32_0 : i32, i32, i32, i32
  }
  func.func @transform_3(%arg0: i32, %arg1: i32, %arg2: i32) -> (i32, i32, i32, i32) {
    %c0_i32 = arith.constant 0 : i32
    %c0_i32_0 = arith.constant 0 : i32
    %c0_i32_1 = arith.constant 0 : i32
    return %arg0, %arg2, %c0_i32, %c0_i32_0 : i32, i32, i32, i32
  }
  func.func @transform_4(%arg0: i32, %arg1: i32, %arg2: i32) -> (i32, i32) {
    %c0_i32 = arith.constant 0 : i32
    %c0_i32_0 = arith.constant 0 : i32
    return %arg1, %c0_i32 : i32, i32
  }
  func.func @transform_5(%arg0: i32, %arg1: i32, %arg2: i32) -> (i32, i32) {
    %c0_i32 = arith.constant 0 : i32
    %c0_i32_0 = arith.constant 0 : i32
    return %arg1, %c0_i32 : i32, i32
  }
  func.func @transform_6(%arg0: i32, %arg1: i32, %arg2: i32) -> (i32, i32) {
    %c0_i32 = arith.constant 0 : i32
    %c0_i32_0 = arith.constant 0 : i32
    return %arg1, %c0_i32 : i32, i32
  }
  func.func @transform_7(%arg0: i32, %arg1: i32, %arg2: i32) -> (i32, i32, i32) {
    %c0_i32 = arith.constant 0 : i32
    return %arg0, %arg1, %arg2 : i32, i32, i32
  }
}

</mosaic_0001>

<bundles_post_ra>
// kernel: downsampling_layer.1
= control target key start
LH: loop header
LB: loop body
LE: loop exit
PB: predicated region body
PF: predicated region fallthrough
CT: control target
= control target key end

     0   :  { %s836_s24 = smov 0   ;;  %s838_s25 = smov 0   ;;  %s905_s0 = inlined_call_operand.vmem [shape: f32[2,1,8,82], index: 0, kind: input, shape index: {}]   ;;  %s906_s1 = inlined_call_operand.vmem [shape: f32[2,1,8,82], index: 1, kind: input, shape index: {}]   ;;  %s907_s2 = inlined_call_operand.vmem [shape: f32[2,1,8,82], index: 2, kind: input, shape index: {}]   ;;  %s908_s3 = inlined_call_operand.vmem [shape: f32[2,1,8,82], index: 3, kind: input, shape index: {}]   ;;  %s909_s4 = inlined_call_operand.vmem [shape: f32[8,72], index: 4, kind: input, shape index: {}]   ;;  %s910_s5 = inlined_call_operand.vmem [shape: f32[8,1], index: 5, kind: input, shape index: {}]   ;;  %s911_s6 = inlined_call_operand.vmem [shape: f32[8,1], index: 6, kind: input, shape index: {}]   ;;  %s912_s7 = inlined_call_operand.vmem [shape: f32[2,8,72], index: 7, kind: output, shape index: {}]  }
   0x1   :  { %s840_s26 = smov 0  }
   0x2 LB: > { %s36_s27 = sadd.s32 1, %s786_s25  ;;  %p729_p0 = scmp.ge.s32.totalorder %s790_s26, 1  ;;  %s790_s26 = sphi %s840_s26, %s17_s26   ;;  %s786_s25 = sphi %s838_s25, %s914_s25   ;;  %s782_s24 = sphi %s836_s24, %s913_s24  }
   0x3   : > { %p38_p1 = scmp.ge.s32.totalorder %s36_s27, 2  ;;  %p333_p2 = scmp.lt.s32.totalorder %s790_s26, 3 }
   0x5   : > { %s916_s27 = smov (%p38_p1, %s36_s27), 0  ;;  %p334_p3 = pnand %p729_p0, %p333_p2 }
   0x6   : > { %p405_p4 = scmp.lt.s32.totalorder (!%p334_p3), %s782_s24, 1  ;;  %s792_s18 = smov (!%p334_p3), 118  }
   0x7   : > { %337 = sbr.rel (%p334_p3) target bundleno = 298 (0x12a), region = 48  ;;  %s793_s19 = smov (!%p334_p3), 119  }
   0x8   : > { %s794_s20 = smov (!%p334_p3), 127  }
   0xc   : > { %s918_s24 = smov (!%p405_p4, %s782_s24), 1  ;;  %vm456_vm0 = vcmask 588800   ;;  %v534_v7 = vld [vmem:[%s911_s6] sm:$0xff]  ;;  %v795_v9 = vmov 0  }
   0xd   : > { %s854_s28 = sshll.u32 %s918_s24, 3  ;;  %v527_v8 = vld [vmem:[%s910_s5] sm:$0xff]  ;;  %767 = vset.pattern.permute.xlu0 %v795_v9  ;;  %766 = vset.pattern.permute.xlu2 %v795_v9 }
   0xe   : > { %s411_s8 = scalar_lea.vmem %s905_s0, %s854_s28  ;;  %s432_s11 = scalar_lea.vmem %s908_s3, %s854_s28  ;;  %v494_v21 = vld [vmem:[%s909_s4] sm:$0xff] }
   0xf   : > { %v468_v0 = vld [vmem:[%s432_s11] sm:$0xff]  ;;  %s418_s14 = scalar_lea.vmem %s906_s1, %s854_s28  ;;  %s425_s17 = scalar_lea.vmem %s907_s2, %s854_s28 }
  0x10   : > { %v488_v1 = vld [vmem:[%s411_s8] sm:$0xff]  ;;  %469 = vst.msk [vmem:[#allocation2 + $0x20] sm:$0xff] %vm456_vm0, %v468_v0  ;;  %s454_s10 = scalar_lea.vmem %s912_s7, %s854_s28 }
  0x11   : > { %490 = vrot.lane.b32.xlu0 %v488_v1, %s792_s18  ;;  %478 = vrot.lane.b32.xlu1 %v488_v1, %s793_s19  ;;  %457 = vst.msk [vmem:[#allocation2] sm:$0xff] %vm456_vm0, %v488_v1  ;;  %v458_v2 = vld [vmem:[%s418_s14] sm:$0xff] }
  0x12   : > { %462 = vrot.lane.b32.xlu2 %v488_v1, %s794_s20  ;;  %459 = vst.msk [vmem:[#allocation2 + $0x8] sm:$0xff] %vm456_vm0, %v458_v2  ;;  %v466_v3 = vld [vmem:[%s425_s17] sm:$0xff] }
  0x13   : > { %467 = vst.msk [vmem:[#allocation2 + $0x18] sm:$0xff] %vm456_vm0, %v466_v3 }
  0x17   : > { %v499_v16 = vld [vmem:[#allocation2 + $0x20] sm:$0xff] }
  0x18   : > { %v495_v20 = vld [vmem:[#allocation2] sm:$0xff] }
  0x19   : > { %484 = vrot.lane.b32.xlu0 %v458_v2, %s793_s19  ;;  %472 = vrot.lane.b32.xlu1 %v466_v3, %s794_s20  ;;  %v496_v19 = vld [vmem:[#allocation2 + $0x8] sm:$0xff] }
  0x1a   : > { %530 = vperm.xlu2 %766, %v527_v8   ;;  %v498_v17 = vld [vmem:[#allocation2 + $0x18] sm:$0xff] }
  0x21   : > { %537 = vperm.xlu0 %767, %v534_v7  }
  0x6c   : > { %v463_v4 = vpop.permute.xlu2 %462 }
  0x6d   : > { %465 = vst.msk [vmem:[#allocation2 + $0x10] sm:$0xff] %vm456_vm0, %v463_v4 }
  0x74   : > { %v497_v18 = vld [vmem:[#allocation2 + $0x10] sm:$0xff]  ;;  %v531_v22 = vpop.permute.xlu2 %530 }
  0x83   : > { %v491_v5 = vpop.permute.xlu0 %490  ;;  %v479_v6 = vpop.permute.xlu1 %478 }
  0x84   : > { %493 = vst.msk [vmem:[#allocation2 + $0x40] sm:$0xff] %vm456_vm0, %v491_v5 }
  0x85   : > { %481 = vst.msk [vmem:[#allocation2 + $0x30] sm:$0xff] %vm456_vm0, %v479_v6 }
  0x8b   : > { %v485_v10 = vpop.permute.xlu0 %484  ;;  %v503_v11 = vld [vmem:[#allocation2 + $0x40] sm:$0xff]  ;;  %v473_v12 = vpop.permute.xlu1 %472 }
  0x8c   : > { %487 = vst.msk [vmem:[#allocation2 + $0x38] sm:$0xff] %vm456_vm0, %v485_v10  ;;  %514 = vmatpush.msra.mxu0 %v503_v11  ;;  %v501_v14 = vld [vmem:[#allocation2 + $0x30] sm:$0xff] }
  0x8d   : > { %475 = vst.msk [vmem:[#allocation2 + $0x28] sm:$0xff] %vm456_vm0, %v473_v12 }
  0x93   : > { %v502_v13 = vld [vmem:[#allocation2 + $0x38] sm:$0xff]  ;;  %v538_v24 = vpop.permute.xlu0 %537 }
  0x94   : > { %515 = vmatpush.msra.mxu0 %v502_v13  ;;  %v500_v15 = vld [vmem:[#allocation2 + $0x28] sm:$0xff] }
  0x96   : > { %516 = vmatpush.msra.mxu0 %v501_v14 }
  0x98   : > { %517 = vmatpush.msra.mxu0 %v500_v15 }
  0x9a   : > { %518 = vmatpush.msra.mxu0 %v499_v16 }
  0x9c   : > { %519 = vmatpush.msra.mxu0 %v498_v17 }
  0x9e   : > { %520 = vmatpush.msra.mxu0 %v497_v18 }
  0xa0   : > { %521 = vmatpush.msra.mxu0 %v496_v19 }
  0xa2   : > { %522 = vmatpush.msra.mxu0 %v495_v20 }
  0xa3   : > { %735 = vmatmul.msk.f32.vlgmr.msra.gmra.mxu0 %vm456_vm0, %v494_v21 }
 0x120   : > { %v524_v23 = vpop.f32.mrf.mxu0 }
 0x121   : > { %v533_v25 = vmul.f32 %v531_v22, %v524_v23 }
 0x123   : > { %v540_v26 = vadd.f32 %v538_v24, %v533_v25 }
 0x125   : > { %v541_v27 = vmul.f32 0.1, %v540_v26 }
 0x127   : > { %v542_v28 = vmax.f32 %v540_v26, %v541_v27 }
 0x129   : > { %543 = vst.msk [vmem:[%s454_s10] sm:$0xff] %vm456_vm0, %v542_v28 }
 0x12a PF: > { %s17_s26 = sadd.s32 1, %s790_s26   ;;  %s913_s24 = smov %s786_s25 }
 0x12b   : > { %p14_p5 = scmp.ge.s32.totalorder %s17_s26, 4   ;;  %s914_s25 = smov %s916_s27 }
 0x12d   :  { %16 = sbr.rel (!%p14_p5) target bundleno = 2 (0x2), region = 96 }

</bundles_post_ra>
